<compile_context>
chip_gen: v5e
topology: v5e:2x2
jax: 0.10.0
libtpu: 0.0.40
codegen_flags: <defaults>
</compile_context>

<pallas_src>
import jax
import jax.numpy as jnp
from jax import lax
from jax.experimental import pallas as pl
from jax.experimental.pallas import tpu as pltpu


def _make_sepconv_kernel(H, W, C, Cout, K, P, G):
    """Builds the kernel for a (G, P*C, H*W) input block.

    P images are packed on the sublane axis (image p, channel c -> row p*C+c);
    G packed groups are processed per grid step (static unroll).
    """
    Ho = H - K + 1
    Wo = W - K + 1
    # Largest valid flat output index is (Ho-1)*W + (Wo-1); L lanes cover it and
    # every tap slice p + kh*W + kw stays inside the H*W input lanes.
    L = (Ho - 1) * W + Wo
    HWo = Ho * W  # lane width of the stride-W output slab (>=128 lane-dense)

    def kernel(x_ref, wdw_ref, wpw_ref, o_ref):
        # x_ref:   (G, P*C, H*W)    spatial flattened onto the lane axis
        # wdw_ref: (P*C, K*K)       depthwise weights (tiled over P)
        # wpw_ref: (Cout, C)        pointwise weights
        # o_ref:   (G, P*Cout, Ho*W) stride-W lane-dense output slab
        wdw = wdw_ref[...]
        if wdw.dtype != jnp.float32:
            wdw = wdw.astype(jnp.float32)
        wpw = wpw_ref[...]
        if wpw.dtype != jnp.float32:
            wpw = wpw.astype(jnp.float32)

        for g in range(G):
            x = x_ref[g]
            if x.dtype != jnp.float32:  # keep f32 accumulation (safe on v5e)
                x = x.astype(jnp.float32)

            # ---- depthwise KxK: K*K shifted lane-window MACs on the VPU -----
            # init with tap (0,0): no zeros materialization, one fewer add
            acc = x[:, 0:L] * wdw[:, 0:1]
            for kh in range(K):
                for kw in range(K):
                    if kh == 0 and kw == 0:
                        continue
                    off = kh * W + kw
                    tap = kh * K + kw
                    acc = acc + x[:, off:off + L] * wdw[:, tap:tap + 1]

            # ---- pointwise 1x1: C sublane-broadcast MACs per packed image ---
            for p in range(P):
                yp = acc[p * C:p * C + 1, :] * wpw[:, 0:1]         # (Cout, L)
                for c in range(1, C):
                    yp = yp + acc[p * C + c:p * C + c + 1, :] * wpw[:, c:c + 1]
                # Dense stride-W store; the garbage columns (j >= Wo) and the
                # last (W-Wo) unwritten lanes are trimmed in the wrapper.
                o_ref[g, p * Cout:(p + 1) * Cout, :L] = yp.astype(o_ref.dtype)

    return kernel, Ho, Wo, L, HWo


def separable_conv2d(x_nchw, w_dw, w_pw):
    """x_nchw: (N, C, H, W); w_dw: (C, 1, K, K); w_pw: (Cout, C, 1, 1).

    Matches nn.Conv2d(groups=C, bias=False) followed by a 1x1 nn.Conv2d
    (stride=1, padding=0, dilation=1, bias=False).
    """
    N, C, H, W = x_nchw.shape
    K = w_dw.shape[-1]
    Cout = w_pw.shape[0]
    assert w_dw.shape == (C, 1, K, K) and w_pw.shape == (Cout, C, 1, 1)

    # Pack 2 f32 images per sublane group when the batch allows it.
    P = 2 if (N % 2 == 0) else 1
    n_groups = N // P

    # Groups per grid step: largest divisor of n_groups under a ~1 MiB / 8x cap.
    itemsize = x_nchw.dtype.itemsize
    bytes_per_group = P * C * H * W * itemsize
    cap = max(1, min(8, (1 << 20) // max(1, bytes_per_group)))
    G = 1
    for d in range(1, n_groups + 1):
        if n_groups % d == 0 and d <= cap:
            G = d

    kernel, Ho, Wo, L, HWo = _make_sepconv_kernel(H, W, C, Cout, K, P, G)

    # Free row-major reshapes only -- no HBM transpose passes.
    x_flat = x_nchw.reshape(n_groups, P * C, H * W)              # (n_groups, P*C, H*W)
    wdw = jnp.tile(w_dw[:, 0, :, :].reshape(C, K * K), (P, 1))   # (P*C, K*K), tiny
    wpw = w_pw[:, :, 0, 0]                                       # (Cout, C), tiny

    flops = 2 * N * Ho * Wo * (C * K * K + Cout * C)
    bytes_accessed = (x_nchw.size * itemsize
                      + wdw.size * wdw.dtype.itemsize
                      + wpw.size * wpw.dtype.itemsize
                      + n_groups * P * Cout * HWo * itemsize)

    out_flat = pl.pallas_call(
        kernel,
        out_shape=jax.ShapeDtypeStruct((n_groups, P * Cout, HWo), x_nchw.dtype),
        grid_spec=pltpu.PrefetchScalarGridSpec(
            num_scalar_prefetch=0,
            grid=(n_groups // G,),
            in_specs=[
                pl.BlockSpec((G, P * C, H * W), lambda n: (n, 0, 0)),
                pl.BlockSpec((P * C, K * K), lambda n: (0, 0)),
                pl.BlockSpec((Cout, C), lambda n: (0, 0)),
            ],
            out_specs=pl.BlockSpec((G, P * Cout, HWo), lambda n: (n, 0, 0)),
        ),
        compiler_params=pltpu.CompilerParams(
            dimension_semantics=("parallel",),
            vmem_limit_bytes=32 * 1024 * 1024),
        cost_estimate=pl.CostEstimate(
            flops=flops, transcendentals=0, bytes_accessed=bytes_accessed),
    )(x_flat, wdw, wpw)

    # (n_groups, P*Cout, Ho*W) -> (N, Cout, Ho, W) is a free row-major reshape;
    # the [:Wo] slice trims the stride-W tail columns (garbage / unwritten).
    return out_flat.reshape(N, Cout, Ho, W)[..., :Wo]


def reference_separable_conv2d(x_nchw, w_dw, w_pw):
    """Pure-JAX reference matching nn.Conv2d(groups=C) then 1x1 conv."""
    C = x_nchw.shape[1]
    dw = lax.conv_general_dilated(
        x_nchw, w_dw, window_strides=(1, 1), padding="VALID",
        dimension_numbers=("NCHW", "OIHW", "NCHW"),
        feature_group_count=C)
    pw = lax.conv_general_dilated(
        dw, w_pw, window_strides=(1, 1), padding="VALID",
        dimension_numbers=("NCHW", "OIHW", "NCHW"))
    return pw


if __name__ == "__main__":
    # SeparableConv2d(in_channels=4, out_channels=8, kernel_size=3)
    # (defaults: stride=1, padding=0, dilation=1, bias=False)
    N, Cin, H, W = 2, 4, 16, 16
    Cout, K = 8, 3

    key = jax.random.PRNGKey(0)
    kx, kdw, kpw = jax.random.split(key, 3)
    x = jax.random.normal(kx, (N, Cin, H, W), dtype=jnp.float32)
    # Deterministic synthetic parameter init (shapes match nn.Conv2d weights).
    w_dw = 0.1 * jax.random.normal(kdw, (Cin, 1, K, K), dtype=jnp.float32)
    w_pw = 0.1 * jax.random.normal(kpw, (Cout, Cin, 1, 1), dtype=jnp.float32)

    out = separable_conv2d(x, w_dw, w_pw)
    out = jax.block_until_ready(out)

    ref = jax.block_until_ready(reference_separable_conv2d(x, w_dw, w_pw))
    assert out.shape == ref.shape == (N, Cout, H - K + 1, W - K + 1)
    assert jnp.allclose(out, ref, atol=1e-5, rtol=1e-5)

    print("KERNEL_OK")
</pallas_src>

<mosaic_0001>
module attributes {stable_mosaic.version = 11 : i64} {
  func.func @kernel(%arg0: i32, %arg1: memref<1x8x256xf32, #tpu.memory_space<vmem>>, %arg2: memref<8x9xf32, #tpu.memory_space<vmem>>, %arg3: memref<8x4xf32, #tpu.memory_space<vmem>>, %arg4: memref<1x16x224xf32, #tpu.memory_space<vmem>>) attributes {dimension_semantics = [#tpu.dimension_semantics<parallel>], iteration_bounds = array<i64: 1>, scalar_prefetch = 0 : i64, scratch_operands = 0 : i64, tpu.core_type = #tpu.core_type<tc>, window_params = [{transform_indices = @transform_0, window_bounds = array<i64: 1, 8, 256>}, {pipeline_mode = #tpu.pipeline_mode<synchronous>, transform_indices = @transform_1, window_bounds = array<i64: 8, 9>}, {pipeline_mode = #tpu.pipeline_mode<synchronous>, transform_indices = @transform_2, window_bounds = array<i64: 8, 4>}, {transform_indices = @transform_3, window_bounds = array<i64: 1, 16, 224>}]} {
    %c0 = arith.constant 0 : index
    %c0_0 = arith.constant 0 : index
    %0 = vector.load %arg2[%c0, %c0_0] : memref<8x9xf32, #tpu.memory_space<vmem>>, vector<8x9xf32>
    %c0_1 = arith.constant 0 : index
    %c0_2 = arith.constant 0 : index
    %1 = vector.load %arg3[%c0_1, %c0_2] : memref<8x4xf32, #tpu.memory_space<vmem>>, vector<8x4xf32>
    %c0_3 = arith.constant 0 : index
    %c0_4 = arith.constant 0 : index
    %c0_5 = arith.constant 0 : index
    %2 = vector.load %arg1[%c0_3, %c0_4, %c0_5] : memref<1x8x256xf32, #tpu.memory_space<vmem>>, vector<1x8x256xf32>
    %3 = vector.shape_cast %2 : vector<1x8x256xf32> to vector<8x256xf32>
    %4 = vector.extract_strided_slice %3 {offsets = [0, 0], sizes = [8, 222], strides = [1, 1]} : vector<8x256xf32> to vector<8x222xf32>
    %5 = vector.extract_strided_slice %0 {offsets = [0, 0], sizes = [8, 1], strides = [1, 1]} : vector<8x9xf32> to vector<8x1xf32>
    %6 = vector.broadcast %5 : vector<8x1xf32> to vector<8x222xf32>
    %7 = arith.mulf %4, %6 : vector<8x222xf32>
    %8 = vector.extract_strided_slice %3 {offsets = [0, 1], sizes = [8, 222], strides = [1, 1]} : vector<8x256xf32> to vector<8x222xf32>
    %9 = vector.extract_strided_slice %0 {offsets = [0, 1], sizes = [8, 1], strides = [1, 1]} : vector<8x9xf32> to vector<8x1xf32>
    %10 = vector.broadcast %9 : vector<8x1xf32> to vector<8x222xf32>
    %11 = arith.mulf %8, %10 : vector<8x222xf32>
    %12 = arith.addf %7, %11 : vector<8x222xf32>
    %13 = vector.extract_strided_slice %3 {offsets = [0, 2], sizes = [8, 222], strides = [1, 1]} : vector<8x256xf32> to vector<8x222xf32>
    %14 = vector.extract_strided_slice %0 {offsets = [0, 2], sizes = [8, 1], strides = [1, 1]} : vector<8x9xf32> to vector<8x1xf32>
    %15 = vector.broadcast %14 : vector<8x1xf32> to vector<8x222xf32>
    %16 = arith.mulf %13, %15 : vector<8x222xf32>
    %17 = arith.addf %12, %16 : vector<8x222xf32>
    %18 = vector.extract_strided_slice %3 {offsets = [0, 16], sizes = [8, 222], strides = [1, 1]} : vector<8x256xf32> to vector<8x222xf32>
    %19 = vector.extract_strided_slice %0 {offsets = [0, 3], sizes = [8, 1], strides = [1, 1]} : vector<8x9xf32> to vector<8x1xf32>
    %20 = vector.broadcast %19 : vector<8x1xf32> to vector<8x222xf32>
    %21 = arith.mulf %18, %20 : vector<8x222xf32>
    %22 = arith.addf %17, %21 : vector<8x222xf32>
    %23 = vector.extract_strided_slice %3 {offsets = [0, 17], sizes = [8, 222], strides = [1, 1]} : vector<8x256xf32> to vector<8x222xf32>
    %24 = vector.extract_strided_slice %0 {offsets = [0, 4], sizes = [8, 1], strides = [1, 1]} : vector<8x9xf32> to vector<8x1xf32>
    %25 = vector.broadcast %24 : vector<8x1xf32> to vector<8x222xf32>
    %26 = arith.mulf %23, %25 : vector<8x222xf32>
    %27 = arith.addf %22, %26 : vector<8x222xf32>
    %28 = vector.extract_strided_slice %3 {offsets = [0, 18], sizes = [8, 222], strides = [1, 1]} : vector<8x256xf32> to vector<8x222xf32>
    %29 = vector.extract_strided_slice %0 {offsets = [0, 5], sizes = [8, 1], strides = [1, 1]} : vector<8x9xf32> to vector<8x1xf32>
    %30 = vector.broadcast %29 : vector<8x1xf32> to vector<8x222xf32>
    %31 = arith.mulf %28, %30 : vector<8x222xf32>
    %32 = arith.addf %27, %31 : vector<8x222xf32>
    %33 = vector.extract_strided_slice %3 {offsets = [0, 32], sizes = [8, 222], strides = [1, 1]} : vector<8x256xf32> to vector<8x222xf32>
    %34 = vector.extract_strided_slice %0 {offsets = [0, 6], sizes = [8, 1], strides = [1, 1]} : vector<8x9xf32> to vector<8x1xf32>
    %35 = vector.broadcast %34 : vector<8x1xf32> to vector<8x222xf32>
    %36 = arith.mulf %33, %35 : vector<8x222xf32>
    %37 = arith.addf %32, %36 : vector<8x222xf32>
    %38 = vector.extract_strided_slice %3 {offsets = [0, 33], sizes = [8, 222], strides = [1, 1]} : vector<8x256xf32> to vector<8x222xf32>
    %39 = vector.extract_strided_slice %0 {offsets = [0, 7], sizes = [8, 1], strides = [1, 1]} : vector<8x9xf32> to vector<8x1xf32>
    %40 = vector.broadcast %39 : vector<8x1xf32> to vector<8x222xf32>
    %41 = arith.mulf %38, %40 : vector<8x222xf32>
    %42 = arith.addf %37, %41 : vector<8x222xf32>
    %43 = vector.extract_strided_slice %3 {offsets = [0, 34], sizes = [8, 222], strides = [1, 1]} : vector<8x256xf32> to vector<8x222xf32>
    %44 = vector.extract_strided_slice %0 {offsets = [0, 8], sizes = [8, 1], strides = [1, 1]} : vector<8x9xf32> to vector<8x1xf32>
    %45 = vector.broadcast %44 : vector<8x1xf32> to vector<8x222xf32>
    %46 = arith.mulf %43, %45 : vector<8x222xf32>
    %47 = arith.addf %42, %46 : vector<8x222xf32>
    %48 = vector.extract_strided_slice %47 {offsets = [0, 0], sizes = [1, 222], strides = [1, 1]} : vector<8x222xf32> to vector<1x222xf32>
    %49 = vector.extract_strided_slice %1 {offsets = [0, 0], sizes = [8, 1], strides = [1, 1]} : vector<8x4xf32> to vector<8x1xf32>
    %50 = vector.broadcast %48 : vector<1x222xf32> to vector<8x222xf32>
    %51 = vector.broadcast %49 : vector<8x1xf32> to vector<8x222xf32>
    %52 = arith.mulf %50, %51 : vector<8x222xf32>
    %53 = vector.extract_strided_slice %47 {offsets = [1, 0], sizes = [1, 222], strides = [1, 1]} : vector<8x222xf32> to vector<1x222xf32>
    %54 = vector.extract_strided_slice %1 {offsets = [0, 1], sizes = [8, 1], strides = [1, 1]} : vector<8x4xf32> to vector<8x1xf32>
    %55 = vector.broadcast %53 : vector<1x222xf32> to vector<8x222xf32>
    %56 = vector.broadcast %54 : vector<8x1xf32> to vector<8x222xf32>
    %57 = arith.mulf %55, %56 : vector<8x222xf32>
    %58 = arith.addf %52, %57 : vector<8x222xf32>
    %59 = vector.extract_strided_slice %47 {offsets = [2, 0], sizes = [1, 222], strides = [1, 1]} : vector<8x222xf32> to vector<1x222xf32>
    %60 = vector.extract_strided_slice %1 {offsets = [0, 2], sizes = [8, 1], strides = [1, 1]} : vector<8x4xf32> to vector<8x1xf32>
    %61 = vector.broadcast %59 : vector<1x222xf32> to vector<8x222xf32>
    %62 = vector.broadcast %60 : vector<8x1xf32> to vector<8x222xf32>
    %63 = arith.mulf %61, %62 : vector<8x222xf32>
    %64 = arith.addf %58, %63 : vector<8x222xf32>
    %65 = vector.extract_strided_slice %47 {offsets = [3, 0], sizes = [1, 222], strides = [1, 1]} : vector<8x222xf32> to vector<1x222xf32>
    %66 = vector.extract_strided_slice %1 {offsets = [0, 3], sizes = [8, 1], strides = [1, 1]} : vector<8x4xf32> to vector<8x1xf32>
    %67 = vector.broadcast %65 : vector<1x222xf32> to vector<8x222xf32>
    %68 = vector.broadcast %66 : vector<8x1xf32> to vector<8x222xf32>
    %69 = arith.mulf %67, %68 : vector<8x222xf32>
    %70 = arith.addf %64, %69 : vector<8x222xf32>
    %c0_6 = arith.constant 0 : index
    %c0_7 = arith.constant 0 : index
    %c0_8 = arith.constant 0 : index
    %71 = vector.load %arg4[%c0_6, %c0_7, %c0_8] : memref<1x16x224xf32, #tpu.memory_space<vmem>>, vector<1x8x222xf32>
    %72 = vector.shape_cast %71 : vector<1x8x222xf32> to vector<8x222xf32>
    %73 = vector.shape_cast %70 : vector<8x222xf32> to vector<1x8x222xf32>
    tpu.vector_store %arg4[%c0_6, %c0_7, %c0_8], %73 {strides = array<i32>} : memref<1x16x224xf32, #tpu.memory_space<vmem>>, vector<1x8x222xf32>,
    %74 = vector.extract_strided_slice %47 {offsets = [4, 0], sizes = [1, 222], strides = [1, 1]} : vector<8x222xf32> to vector<1x222xf32>
    %75 = vector.extract_strided_slice %1 {offsets = [0, 0], sizes = [8, 1], strides = [1, 1]} : vector<8x4xf32> to vector<8x1xf32>
    %76 = vector.broadcast %74 : vector<1x222xf32> to vector<8x222xf32>
    %77 = vector.broadcast %75 : vector<8x1xf32> to vector<8x222xf32>
    %78 = arith.mulf %76, %77 : vector<8x222xf32>
    %79 = vector.extract_strided_slice %47 {offsets = [5, 0], sizes = [1, 222], strides = [1, 1]} : vector<8x222xf32> to vector<1x222xf32>
    %80 = vector.extract_strided_slice %1 {offsets = [0, 1], sizes = [8, 1], strides = [1, 1]} : vector<8x4xf32> to vector<8x1xf32>
    %81 = vector.broadcast %79 : vector<1x222xf32> to vector<8x222xf32>
    %82 = vector.broadcast %80 : vector<8x1xf32> to vector<8x222xf32>
    %83 = arith.mulf %81, %82 : vector<8x222xf32>
    %84 = arith.addf %78, %83 : vector<8x222xf32>
    %85 = vector.extract_strided_slice %47 {offsets = [6, 0], sizes = [1, 222], strides = [1, 1]} : vector<8x222xf32> to vector<1x222xf32>
    %86 = vector.extract_strided_slice %1 {offsets = [0, 2], sizes = [8, 1], strides = [1, 1]} : vector<8x4xf32> to vector<8x1xf32>
    %87 = vector.broadcast %85 : vector<1x222xf32> to vector<8x222xf32>
    %88 = vector.broadcast %86 : vector<8x1xf32> to vector<8x222xf32>
    %89 = arith.mulf %87, %88 : vector<8x222xf32>
    %90 = arith.addf %84, %89 : vector<8x222xf32>
    %91 = vector.extract_strided_slice %47 {offsets = [7, 0], sizes = [1, 222], strides = [1, 1]} : vector<8x222xf32> to vector<1x222xf32>
    %92 = vector.extract_strided_slice %1 {offsets = [0, 3], sizes = [8, 1], strides = [1, 1]} : vector<8x4xf32> to vector<8x1xf32>
    %93 = vector.broadcast %91 : vector<1x222xf32> to vector<8x222xf32>
    %94 = vector.broadcast %92 : vector<8x1xf32> to vector<8x222xf32>
    %95 = arith.mulf %93, %94 : vector<8x222xf32>
    %96 = arith.addf %90, %95 : vector<8x222xf32>
    %c0_9 = arith.constant 0 : index
    %c8 = arith.constant 8 : index
    %c0_10 = arith.constant 0 : index
    %97 = vector.load %arg4[%c0_9, %c8, %c0_10] : memref<1x16x224xf32, #tpu.memory_space<vmem>>, vector<1x8x222xf32>
    %98 = vector.shape_cast %97 : vector<1x8x222xf32> to vector<8x222xf32>
    %99 = vector.shape_cast %96 : vector<8x222xf32> to vector<1x8x222xf32>
    tpu.vector_store %arg4[%c0_9, %c8, %c0_10], %99 {strides = array<i32>} : memref<1x16x224xf32, #tpu.memory_space<vmem>>, vector<1x8x222xf32>,
    return
  }
  func.func @transform_0(%arg0: i32) -> (i32, i32, i32) {
    %c0_i32 = arith.constant 0 : i32
    %c0_i32_0 = arith.constant 0 : i32
    %c0_i32_1 = arith.constant 0 : i32
    return %arg0, %c0_i32, %c0_i32_0 : i32, i32, i32
  }
  func.func @transform_1(%arg0: i32) -> (i32, i32) {
    %c0_i32 = arith.constant 0 : i32
    %c0_i32_0 = arith.constant 0 : i32
    %c0_i32_1 = arith.constant 0 : i32
    return %c0_i32, %c0_i32_0 : i32, i32
  }
  func.func @transform_2(%arg0: i32) -> (i32, i32) {
    %c0_i32 = arith.constant 0 : i32
    %c0_i32_0 = arith.constant 0 : i32
    %c0_i32_1 = arith.constant 0 : i32
    return %c0_i32, %c0_i32_0 : i32, i32
  }
  func.func @transform_3(%arg0: i32) -> (i32, i32, i32) {
    %c0_i32 = arith.constant 0 : i32
    %c0_i32_0 = arith.constant 0 : i32
    %c0_i32_1 = arith.constant 0 : i32
    return %arg0, %c0_i32, %c0_i32_0 : i32, i32, i32
  }
}

</mosaic_0001>

<bundles_post_ra>
// kernel: tpu_custom_call.1
= control target key start
LH: loop header
LB: loop body
LE: loop exit
PB: predicated region body
PF: predicated region fallthrough
CT: control target
= control target key end

     0   :  { %8 = vsyncpa [#allocation3], 0  ;;  %s439_s0 = inlined_call_operand.hbm [shape: f32[1,8,256], index: 0, kind: input, shape index: {}]   ;;  %s440_s1 = inlined_call_operand.vmem [shape: f32[8,9], index: 1, kind: input, shape index: {}]   ;;  %s441_s2 = inlined_call_operand.vmem [shape: f32[8,4], index: 2, kind: input, shape index: {}]   ;;  %s442_s3 = inlined_call_operand.hbm [shape: f32[1,16,224], index: 3, kind: output, shape index: {}]  }
   0x1   :  { %9 = vsyncpa [#allocation4], 0  ;;  %s15_s14 = sshll.u32 %s439_s0, 4  ;;  %s354_s15 = smov [#allocation2]   ;;  %s16_s14 = int_to_ptr.hbm [resolvable:$true] %s15_s14 }
   0x2   :  { %s17_s16 = sshll.u32 %s354_s15, 4  ;;  %s18_s16 = int_to_ptr.vmem [resolvable:$true] %s17_s16 }
   0x3   :  { %20 = dma.hbm_to_vmem [thread:$0]  %s16_s14, 256, %s18_s16, [#allocation3]  }
   0x4   :  { %350 = dma.done.wait [#allocation3], 256  }
   0x5   :  { %351 = vsyncadd [#allocation3], 4294967040  ;;  %v355_v0 = vmov 1   ;;  %v356_v1 = vmov 4   ;;  %v357_v2 = vmov 2   ;;  %v29_v3 = vld [vmem:[%s440_s1] sm:$0xff] }
   0x6   :  { %289 = vset.pattern.permute.xlu0 %v355_v0  ;;  %292 = vset.pattern.permute.xlu1 %v356_v1  ;;  %v358_v4 = vmov 6   ;;  %v359_v5 = vmov 7   ;;  %v360_v6 = vmov 3   ;;  %v361_v7 = vmov 5   ;;  %v402_v10 = vld [vmem:[#allocation2 + $0x8] sm:$0xff]  ;;  %s364_s0 = smov 126  }
   0x7   :  { %290 = vset.pattern.permute.xlu2 %v357_v2  ;;  %41 = vperm.xlu0 %289, %v29_v3   ;;  %v362_v8 = vmov 8   ;;  %v363_v9 = vmov 0   ;;  %v406_v13 = vld [vmem:[#allocation2] sm:$0xff]  ;;  %s365_s1 = smov 112   ;;  %s366_s19 = smov 127   ;;  %vm52_vm0 = vcmask 1039360  }
   0x8   :  { %95 = vperm.xlu1 %292, %v29_v3   ;;  %59 = vperm.xlu2 %290, %v29_v3   ;;  %s367_s20 = smov 111   ;;  %s368_s21 = smov 96   ;;  %v30_v33 = vld [vmem:[%s441_s2] sm:$0xff]  ;;  %vm70_vm1 = vcmask 1031168   ;;  %vm88_vm2 = vcmask 916480   ;;  %vm106_vm3 = vcmask 908288  }
   0x9   :  { %s369_s22 = smov 110   ;;  %s370_s23 = smov 95   ;;  %vm124_vm4 = vcmask 900096   ;;  %vm142_vm5 = vcmask 785408   ;;  %vm160_vm6 = vcmask 777216   ;;  %vm178_vm7 = vcmask 769024  }
   0xa   :  { %s371_s26 = smov 94   ;;  %s372_s2 = smov [#allocation5]  }
   0xb   :  { %s253_s27 = sshll.u32 %s372_s2, 4  ;;  %s255_s30 = sshll.u32 %s442_s3, 4  ;;  %s254_s27 = int_to_ptr.vmem [resolvable:$true] %s253_s27  ;;  %s256_s30 = int_to_ptr.hbm [resolvable:$true] %s255_s30 }
   0xc   :  { %s373_s4 = smov 256   ;;  %s374_s5 = smov 16  }
   0xf   :  { %294 = vset.pattern.permute.xlu0 %v358_v4 }
  0x10   :  { %296 = vset.pattern.permute.xlu1 %v359_v5  ;;  %131 = vperm.xlu0 %294, %v29_v3  }
  0x11   :  { %291 = vset.pattern.permute.xlu2 %v360_v6  ;;  %149 = vperm.xlu1 %296, %v29_v3  }
  0x12   :  { %77 = vperm.xlu2 %291, %v29_v3  }
  0x18   :  { %295 = vset.pattern.permute.xlu0 %v363_v9 }
  0x19   :  { %298 = vset.pattern.permute.xlu1 %v355_v0  ;;  %35 = vperm.xlu0 %295, %v29_v3  }
  0x1a   :  { %293 = vset.pattern.permute.xlu2 %v361_v7 }
  0x1b   :  { %113 = vperm.xlu2 %293, %v29_v3  }
  0x23   :  { %297 = vset.pattern.permute.xlu2 %v362_v8 }
  0x24   :  { %167 = vperm.xlu2 %297, %v29_v3  }
  0x2c   :  { %299 = vset.pattern.permute.xlu2 %v357_v2 }
  0x62   :  { %v60_v11 = vpop.permute.xlu2 %59 }
  0x63   :  { %v63_v12 = vmul.f32 %v60_v11, %v402_v10  ;;  %v62_v29 = vmul.f32 %v60_v11, %v406_v13 }
  0x65   :  { %68 = vrot.lane.b32.xlu2 %v63_v12, %s364_s0 }
  0x6c   :  { %v78_v14 = vpop.permute.xlu2 %77 }
  0x6d   :  { %v80_v15 = vmul.f32 %v78_v14, %v406_v13  ;;  %v81_v31 = vmul.f32 %v78_v14, %v402_v10 }
  0x6f   :  { %84 = vrot.lane.b32.xlu0 %v80_v15, %s365_s1 }
  0x75   :  { %v114_v21 = vpop.permute.xlu2 %113 }
  0x76   :  { %v117_v22 = vmul.f32 %v114_v21, %v402_v10  ;;  %v116_v34 = vmul.f32 %v114_v21, %v406_v13 }
  0x79   :  { %v42_v16 = vpop.permute.xlu0 %41 }
  0x7a   :  { %v96_v17 = vpop.permute.xlu1 %95  ;;  %v44_v18 = vmul.f32 %v42_v16, %v406_v13  ;;  %v45_v23 = vmul.f32 %v42_v16, %v402_v10 }
  0x7b   :  { %v98_v19 = vmul.f32 %v96_v17, %v406_v13  ;;  %v99_v20 = vmul.f32 %v96_v17, %v402_v10 }
  0x7c   :  { %48 = vrot.lane.b32.xlu1 %v44_v18, %s366_s19 }
  0x7d   :  { %104 = vrot.lane.b32.xlu0 %v99_v20, %s367_s20  ;;  %102 = vrot.lane.b32.xlu2 %v98_v19, %s367_s20 }
  0x7e   :  { %v168_v30 = vpop.permute.xlu2 %167 }
  0x7f   :  { %v171_v32 = vmul.f32 %v168_v30, %v402_v10  ;;  %v170_v36 = vmul.f32 %v168_v30, %v406_v13 }
  0x82   :  { %v132_v24 = vpop.permute.xlu0 %131 }
  0x83   :  { %v134_v25 = vmul.f32 %v132_v24, %v406_v13  ;;  %v150_v26 = vpop.permute.xlu1 %149  ;;  %v135_v35 = vmul.f32 %v132_v24, %v402_v10 }
  0x84   :  { %50 = vrot.lane.b32.xlu1 %v45_v23, %s366_s19  ;;  %v152_v27 = vmul.f32 %v150_v26, %v406_v13  ;;  %v153_v28 = vmul.f32 %v150_v26, %v402_v10 }
  0x85   :  { %138 = vrot.lane.b32.xlu0 %v134_v25, %s368_s21  ;;  %122 = vrot.lane.b32.xlu2 %v117_v22, %s369_s22 }
  0x8b   :  { %v36_v38 = vpop.permute.xlu0 %35 }
  0x8c   :  { %66 = vrot.lane.b32.xlu1 %v62_v29, %s364_s0  ;;  %v39_v44 = vmul.f32 %v36_v38, %v402_v10  ;;  %v38_v49 = vmul.f32 %v36_v38, %v406_v13 }
  0x8d   :  { %158 = vrot.lane.b32.xlu0 %v153_v28, %s370_s23  ;;  %156 = vrot.lane.b32.xlu2 %v152_v27, %s370_s23 }
  0x94   :  { %86 = vrot.lane.b32.xlu1 %v81_v31, %s365_s1 }
  0x95   :  { %188 = vperm.xlu0 %295, %v30_v33   ;;  %176 = vrot.lane.b32.xlu2 %v171_v32, %s371_s26 }
  0x9c   :  { %120 = vrot.lane.b32.xlu1 %v116_v34, %s369_s22 }
  0x9d   :  { %206 = vperm.xlu2 %299, %v30_v33   ;;  %301 = vset.pattern.permute.xlu0 %v360_v6 }
  0xa4   :  { %140 = vrot.lane.b32.xlu1 %v135_v35, %s368_s21 }
  0xac   :  { %174 = vrot.lane.b32.xlu1 %v170_v36, %s371_s26 }
  0xb4   :  { %196 = vperm.xlu1 %298, %v30_v33  }
  0xbc   :  { %300 = vset.pattern.permute.xlu1 %v360_v6 }
  0xbd   :  { %216 = vperm.xlu1 %300, %v30_v33  }
  0xbf   :  { %v69_v40 = vpop.permute.xlu2 %68 }
  0xd7   :  { %v103_v43 = vpop.permute.xlu2 %102 }
  0xdf   :  { %v123_v48 = vpop.permute.xlu2 %122 }
  0xe1   :  { %v85_v41 = vpop.permute.xlu0 %84 }
  0xe7   :  { %v157_v61 = vpop.permute.xlu2 %156 }
  0xee   :  { %v49_v37 = vpop.permute.xlu1 %48 }
  0xef   :  { %v105_v46 = vpop.permute.xlu0 %104  ;;  %v177_v10 = vpop.permute.xlu2 %176 }
  0xf0   :  { %v107_v62 = vsel %vm106_vm3, %v103_v43, %v105_v46 }
  0xf6   :  { %v51_v39 = vpop.permute.xlu1 %50 }
  0xf7   :  { %v57_v47 = vadd.f32 %v51_v39, %v39_v44  ;;  %v53_v50 = vsel %vm52_vm0, %v49_v37, %v51_v39  ;;  %v139_v57 = vpop.permute.xlu0 %138  ;;  %v207_v36 = vpop.permute.xlu2 %206 }
  0xf8   :  { %v56_v55 = vadd.f32 %v53_v50, %v38_v49 }
  0xf9   :  { %v75_v51 = vadd.f32 %v69_v40, %v57_v47 }
  0xfe   :  { %v67_v42 = vpop.permute.xlu1 %66 }
  0xff   :  { %v71_v52 = vsel %vm70_vm1, %v67_v42, %v69_v40  ;;  %v159_v6 = vpop.permute.xlu0 %158 }
 0x100   :  { %v74_v58 = vadd.f32 %v71_v52, %v56_v55  ;;  %v161_v9 = vsel %vm160_vm6, %v157_v61, %v159_v6 }
 0x106   :  { %v87_v45 = vpop.permute.xlu1 %86 }
 0x107   :  { %v93_v53 = vadd.f32 %v87_v45, %v75_v51  ;;  %v89_v56 = vsel %vm88_vm2, %v85_v41, %v87_v45  ;;  %v189_v24 = vpop.permute.xlu0 %188 }
 0x108   :  { %v92_v60 = vadd.f32 %v89_v56, %v74_v58 }
 0x109   :  { %v111_v59 = vadd.f32 %v105_v46, %v93_v53 }
 0x10a   :  { %v110_v2 = vadd.f32 %v107_v62, %v92_v60 }
 0x10b   :  { %v129_v1 = vadd.f32 %v123_v48, %v111_v59 }
 0x10e   :  { %v121_v54 = vpop.permute.xlu1 %120 }
 0x10f   :  { %v125_v63 = vsel %vm124_vm4, %v121_v54, %v123_v48 }
 0x110   :  { %v128_v5 = vadd.f32 %v125_v63, %v110_v2 }
 0x116   :  { %v141_v0 = vpop.permute.xlu1 %140 }
 0x117   :  { %v143_v3 = vsel %vm142_vm5, %v139_v57, %v141_v0  ;;  %v147_v4 = vadd.f32 %v141_v0, %v129_v1 }
 0x118   :  { %v146_v7 = vadd.f32 %v143_v3, %v128_v5 }
 0x119   :  { %v165_v8 = vadd.f32 %v159_v6, %v147_v4 }
 0x11a   :  { %v164_v12 = vadd.f32 %v161_v9, %v146_v7 }
 0x11b   :  { %v183_v14 = vadd.f32 %v177_v10, %v165_v8 }
 0x11d   :  { %v185_v16 = vperm.slane %v183_v14, 0  ;;  %v194_v17 = vperm.slane %v183_v14, 1  ;;  %v226_v23 = vperm.slane %v183_v14, 4  ;;  %v230_v27 = vperm.slane %v183_v14, 5 }
 0x11e   :  { %v175_v11 = vpop.permute.xlu1 %174  ;;  %v204_v29 = vperm.slane %v183_v14, 2  ;;  %v236_v37 = vperm.slane %v183_v14, 6  ;;  %v214_v47 = vperm.slane %v183_v14, 3  ;;  %v242_v49 = vperm.slane %v183_v14, 7 }
 0x11f   :  { %v179_v13 = vsel %vm178_vm7, %v175_v11, %v177_v10  ;;  %v192_v30 = vmul.f32 %v189_v24, %v185_v16  ;;  %v228_v40 = vmul.f32 %v226_v23, %v189_v24 }
 0x120   :  { %v182_v15 = vadd.f32 %v179_v13, %v164_v12  ;;  %v210_v42 = vmul.f32 %v207_v36, %v204_v29  ;;  %v238_v50 = vmul.f32 %v236_v37, %v207_v36 }
 0x122   :  { %v184_v18 = vperm.slane %v182_v15, 0  ;;  %v193_v19 = vperm.slane %v182_v15, 1  ;;  %v225_v20 = vperm.slane %v182_v15, 4  ;;  %v229_v21 = vperm.slane %v182_v15, 5 }
 0x123   :  { %v203_v31 = vperm.slane %v182_v15, 2  ;;  %v235_v35 = vperm.slane %v182_v15, 6  ;;  %v213_v46 = vperm.slane %v182_v15, 3  ;;  %v241_v48 = vperm.slane %v182_v15, 7 }
 0x124   :  { %v191_v32 = vmul.f32 %v189_v24, %v184_v18  ;;  %v227_v33 = vmul.f32 %v225_v20, %v189_v24 }
 0x125   :  { %v209_v44 = vmul.f32 %v207_v36, %v203_v31  ;;  %v237_v45 = vmul.f32 %v235_v35, %v207_v36 }
 0x126   :  { %v197_v22 = vpop.permute.xlu1 %196 }
 0x127   :  { %v199_v25 = vmul.f32 %v197_v22, %v193_v19  ;;  %v200_v26 = vmul.f32 %v197_v22, %v194_v17  ;;  %v231_v28 = vmul.f32 %v229_v21, %v197_v22  ;;  %v232_v34 = vmul.f32 %v230_v27, %v197_v22 }
 0x129   :  { %v201_v38 = vadd.f32 %v199_v25, %v191_v32  ;;  %v202_v39 = vadd.f32 %v200_v26, %v192_v30  ;;  %v233_v41 = vadd.f32 %v231_v28, %v227_v33  ;;  %v234_v43 = vadd.f32 %v232_v34, %v228_v40 }
 0x12b   :  { %v211_v52 = vadd.f32 %v209_v44, %v201_v38  ;;  %v212_v53 = vadd.f32 %v210_v42, %v202_v39  ;;  %v239_v54 = vadd.f32 %v237_v45, %v233_v41  ;;  %v240_v59 = vadd.f32 %v238_v50, %v234_v43 }
 0x12f   :  { %v217_v51 = vpop.permute.xlu1 %216 }
 0x130   :  { %v219_v55 = vmul.f32 %v217_v51, %v213_v46  ;;  %v220_v56 = vmul.f32 %v217_v51, %v214_v47  ;;  %v243_v57 = vmul.f32 %v241_v48, %v217_v51  ;;  %v244_v58 = vmul.f32 %v242_v49, %v217_v51 }
 0x132   :  { %v221_v60 = vadd.f32 %v219_v55, %v211_v52  ;;  %v222_v61 = vadd.f32 %v220_v56, %v212_v53  ;;  %v245_v62 = vadd.f32 %v243_v57, %v239_v54  ;;  %v246_v63 = vadd.f32 %v244_v58, %v240_v59 }
 0x134   :  { %223 = vst [vmem:[#allocation5] sm:$0xff] %v221_v60 }
 0x135   :  { %224 = vst.msk [vmem:[#allocation5 + $0x8] sm:$0xff] %vm178_vm7, %v222_v61 }
 0x136   :  { %247 = vst [vmem:[#allocation5 + $0x10] sm:$0xff] %v245_v62 }
 0x137   :  { %248 = vst.msk [vmem:[#allocation5 + $0x18] sm:$0xff] %vm178_vm7, %v246_v63 }
 0x138   :  { %261 = dma.vmem_to_hbm [thread:$0]  %s254_s27, 512, %s256_s30, [#allocation4], %s373_s4, %s373_s4, %s374_s5  }
 0x139   :  { %352 = dma.done.wait [#allocation4], 512  }
 0x13a   :  { %353 = vsyncadd [#allocation4], 4294966784 }
 0x13b   :  { %266 = vsyncpa [#allocation3], 1 }
 0x13c   :  { %267 = vsyncpa [#allocation4], 1 }

</bundles_post_ra>
